<compile_context>
chip_gen: v6e
topology: v6e:2x2x1
jax: 0.10.0
libtpu: 0.0.40
codegen_flags: <defaults>
</compile_context>

<pallas_src>
import jax
import jax.numpy as jnp
from jax.experimental import pallas as pl
from jax.experimental.pallas import tpu as pltpu


def _balanced_softmax_kernel(logits_ref, log_freq_ref, target_ref, out_ref):
    # z = logits + log(class_freq); the only materialized (TB, C) f32 temp.
    z = logits_ref[...].astype(jnp.float32) + log_freq_ref[...]      # (TB, C)
    tgt = target_ref[...]                                            # (TB, 1) i32

    # Numerically-safe logsumexp over the class (lane) axis.
    m = jnp.max(z, axis=1, keepdims=True)                            # XLU
    sum_exp = jnp.sum(jnp.exp(z - m), axis=1, keepdims=True)         # EUP + XLU

    # torch.gather(z, 1, target[:, None]) via in-register one-hot + lane reduce.
    col_ids = jax.lax.broadcasted_iota(jnp.int32, z.shape, 1)        # no VMEM load
    z_t = jnp.sum(jnp.where(col_ids == tgt, z, 0.0), axis=1, keepdims=True)

    # loss = log(sum(exp(l)*f) + 1e-12) - log(exp(l_t)*f_t)  ==  lse(z) - z_t
    out_ref[...] = m + jnp.log(sum_exp) - z_t


def _round_up(x, m):
    return (x + m - 1) // m * m


def balanced_softmax(logits, class_freq, target, *, tb=1024):
    """logits: (B, C), class_freq: (C,), target: (B,) int -> (B, 1, 1) f32."""
    B, C = logits.shape

    # One-time C-length ops hoisted out of the kernel.
    log_freq = jnp.log(class_freq.astype(jnp.float32)).reshape(1, C)
    tgt_2d = target.reshape(B, 1).astype(jnp.int32)

    # Sublane packing: 8 rows (32-bit), 16 (bf16/f16), 32 (8-bit).
    itemsize = jnp.dtype(logits.dtype).itemsize
    pack = max(8, 32 // max(itemsize, 1))

    # Batch tile selection:
    #  * at most `tb` rows, never (much) more than B,
    #  * >= 2 grid steps when B allows (v7x megacore sharding of "parallel" axis),
    #  * per-step VMEM working set (2x input buffers + ~3 f32 temps) <= ~40 MiB,
    #  * rounded to the dtype's sublane packing.
    TB = min(tb, _round_up(B, pack))
    TB = min(TB, max(pack, _round_up(pl.cdiv(B, 2), pack)))
    per_row_bytes = C * (2 * itemsize + 3 * 4)
    vmem_budget = 40 * 1024 * 1024
    TB = min(TB, max(pack, (vmem_budget // per_row_bytes) // pack * pack))
    TB = _round_up(TB, pack)

    # Ragged last block allowed: no padding of logits/target.  Correct only
    # because the (B, 1) output has exactly B rows (OOB writes are masked) and
    # garbage OOB input rows never reach a surviving output row.
    grid = (pl.cdiv(B, TB),)

    out = pl.pallas_call(
        _balanced_softmax_kernel,
        out_shape=jax.ShapeDtypeStruct((B, 1), jnp.float32),
        grid=grid,
        in_specs=[
            pl.BlockSpec((TB, C), lambda i: (i, 0)),   # logits tile, native dtype
            pl.BlockSpec((1, C), lambda i: (0, 0)),    # log_freq: VMEM-resident
            pl.BlockSpec((TB, 1), lambda i: (i, 0)),   # target tile
        ],
        out_specs=pl.BlockSpec((TB, 1), lambda i: (i, 0)),
        compiler_params=pltpu.CompilerParams(
            dimension_semantics=("parallel",),
            vmem_limit_bytes=48 * 1024 * 1024),
    )(logits, log_freq, tgt_2d)

    # loss.unsqueeze(1) -> (B, 1, 1).
    return out.reshape(B, 1, 1)


def _reference(logits, class_freq, target):
    exp_logits = jnp.exp(logits.astype(jnp.float32)) * class_freq.reshape(1, -1)
    gathered = jnp.take_along_axis(exp_logits, target.reshape(-1, 1), axis=1)
    loss = -1.0 * (jnp.log(gathered)
                   - jnp.log(jnp.sum(exp_logits, axis=1, keepdims=True) + 1e-12))
    return loss[:, None, :]


if __name__ == "__main__":
    C = 128  # lane-aligned class count for the small demo

    key = jax.random.PRNGKey(0)
    k_logits, k_tgt, k_freq = jax.random.split(key, 3)

    # Deterministic synthetic per-class frequencies (long-tailed-dataset style).
    class_freq = jax.random.randint(k_freq, (C,), 1, 1000).astype(jnp.float32)

    # Case 1: small batch, divides the tile exactly.
    B = 8
    logits = jax.random.normal(k_logits, (B, C), dtype=jnp.float32)
    target = jax.random.randint(k_tgt, (B,), 0, C, dtype=jnp.int32)
    loss = balanced_softmax(logits, class_freq, target)
    jax.block_until_ready(loss)
    ref = _reference(logits, class_freq, target)
    assert loss.shape == (B, 1, 1), loss.shape
    assert jnp.allclose(loss, ref, rtol=1e-5, atol=1e-5)

    # Case 2: ragged batch (exercises the no-pad last-block path).
    B2 = 10
    logits2 = jax.random.normal(k_logits, (B2, C), dtype=jnp.float32)
    target2 = jax.random.randint(k_tgt, (B2,), 0, C, dtype=jnp.int32)
    loss2 = balanced_softmax(logits2, class_freq, target2)
    jax.block_until_ready(loss2)
    ref2 = _reference(logits2, class_freq, target2)
    assert loss2.shape == (B2, 1, 1), loss2.shape
    assert jnp.allclose(loss2, ref2, rtol=1e-5, atol=1e-5)

    print("KERNEL_OK")
</pallas_src>

<mosaic_0001>
module attributes {stable_mosaic.version = 11 : i64} {
  func.func @_balanced_softmax_kernel(%arg0: i32, %arg1: memref<8x128xf32, #tpu.memory_space<vmem>>, %arg2: memref<1x128xf32, #tpu.memory_space<vmem>>, %arg3: memref<8x1xi32, #tpu.memory_space<vmem>>, %arg4: memref<8x1xf32, #tpu.memory_space<vmem>>) attributes {dimension_semantics = [#tpu.dimension_semantics<parallel>], iteration_bounds = array<i64: 1>, scalar_prefetch = 0 : i64, scratch_operands = 0 : i64, tpu.core_type = #tpu.core_type<tc>, window_params = [{transform_indices = @transform_0, window_bounds = array<i64: 8, 128>}, {pipeline_mode = #tpu.pipeline_mode<synchronous>, transform_indices = @transform_1, window_bounds = array<i64: 1, 128>}, {transform_indices = @transform_2, window_bounds = array<i64: 8, 1>}, {transform_indices = @transform_3, window_bounds = array<i64: 8, 1>}]} {
    %c0 = arith.constant 0 : index
    %c0_0 = arith.constant 0 : index
    %0 = vector.load %arg1[%c0, %c0_0] : memref<8x128xf32, #tpu.memory_space<vmem>>, vector<8x128xf32>
    %c0_1 = arith.constant 0 : index
    %c0_2 = arith.constant 0 : index
    %1 = vector.load %arg2[%c0_1, %c0_2] : memref<1x128xf32, #tpu.memory_space<vmem>>, vector<1x128xf32>
    %2 = vector.broadcast %1 : vector<1x128xf32> to vector<8x128xf32>
    %3 = arith.addf %0, %2 : vector<8x128xf32>
    %c0_3 = arith.constant 0 : index
    %c0_4 = arith.constant 0 : index
    %4 = vector.load %arg3[%c0_3, %c0_4] : memref<8x1xi32, #tpu.memory_space<vmem>>, vector<8x1xi32>
    %cst = arith.constant dense<0xFF800000> : vector<8xf32>
    %5 = vector.multi_reduction <maximumf>, %3, %cst [1] : vector<8x128xf32> to vector<8xf32>
    %6 = vector.shape_cast %5 : vector<8xf32> to vector<8x1xf32>
    %7 = vector.broadcast %6 : vector<8x1xf32> to vector<8x128xf32>
    %8 = arith.subf %3, %7 : vector<8x128xf32>
    %9 = math.exp %8 : vector<8x128xf32>
    %cst_5 = arith.constant dense<0.000000e+00> : vector<8xf32>
    %10 = vector.multi_reduction <add>, %9, %cst_5 [1] : vector<8x128xf32> to vector<8xf32>
    %11 = vector.shape_cast %10 : vector<8xf32> to vector<8x1xf32>
    %12 = tpu.iota {dimensions = array<i32: 1>} : vector<8x128xi32>
    %13 = vector.broadcast %4 : vector<8x1xi32> to vector<8x128xi32>
    %14 = arith.cmpi eq, %12, %13 : vector<8x128xi32>
    %cst_6 = arith.constant 0.000000e+00 : f32
    %15 = vector.broadcast %cst_6 : f32 to vector<8x128xf32>
    %16 = arith.select %14, %3, %15 : vector<8x128xi1>, vector<8x128xf32>
    %cst_7 = arith.constant dense<0.000000e+00> : vector<8xf32>
    %17 = vector.multi_reduction <add>, %16, %cst_7 [1] : vector<8x128xf32> to vector<8xf32>
    %18 = vector.shape_cast %17 : vector<8xf32> to vector<8x1xf32>
    %19 = math.log %11 : vector<8x1xf32>
    %20 = arith.addf %6, %19 : vector<8x1xf32>
    %21 = arith.subf %20, %18 : vector<8x1xf32>
    %c0_8 = arith.constant 0 : index
    %c0_9 = arith.constant 0 : index
    %22 = vector.load %arg4[%c0_8, %c0_9] : memref<8x1xf32, #tpu.memory_space<vmem>>, vector<8x1xf32>
    tpu.vector_store %arg4[%c0_8, %c0_9], %21 {strides = array<i32>} : memref<8x1xf32, #tpu.memory_space<vmem>>, vector<8x1xf32>,
    return
  }
  func.func @transform_0(%arg0: i32) -> (i32, i32) {
    %c0_i32 = arith.constant 0 : i32
    %c0_i32_0 = arith.constant 0 : i32
    return %arg0, %c0_i32 : i32, i32
  }
  func.func @transform_1(%arg0: i32) -> (i32, i32) {
    %c0_i32 = arith.constant 0 : i32
    %c0_i32_0 = arith.constant 0 : i32
    %c0_i32_1 = arith.constant 0 : i32
    return %c0_i32, %c0_i32_0 : i32, i32
  }
  func.func @transform_2(%arg0: i32) -> (i32, i32) {
    %c0_i32 = arith.constant 0 : i32
    %c0_i32_0 = arith.constant 0 : i32
    return %arg0, %c0_i32 : i32, i32
  }
  func.func @transform_3(%arg0: i32) -> (i32, i32) {
    %c0_i32 = arith.constant 0 : i32
    %c0_i32_0 = arith.constant 0 : i32
    return %arg0, %c0_i32 : i32, i32
  }
}

</mosaic_0001>

<bundles_post_ra>
// kernel: tpu_custom_call.1
= control target key start
LH: loop header
LB: loop body
LE: loop exit
PB: predicated region body
PF: predicated region fallthrough
CT: control target
= control target key end

     0   :  { %v57_v2 = vmov 0   ;;  %v31_v8 = vlaneseq  ;;  %vm44_vm1 = vcmask 7168   ;;  %s90_s0 = inlined_call_operand.vmem [shape: f32[8,128], index: 0, kind: input, shape index: {}]   ;;  %s91_s1 = inlined_call_operand.vmem [shape: f32[1,128], index: 1, kind: input, shape index: {}]   ;;  %s92_s2 = inlined_call_operand.vmem [shape: s32[8,1], index: 2, kind: input, shape index: {}]   ;;  %s93_s3 = inlined_call_operand.vmem [shape: f32[8,1], index: 3, kind: output, shape index: {}]  }
   0x1   :  { %v14_v0 = vld [vmem:[%s90_s0] sm:$0xff]  ;;  %52 = vset.pattern.permute.xlu0 %v57_v2 }
   0x2   :  { %v50_v1 = vld [vmem:[%s91_s1] ss:$0 sm:$0xff]  ;;  %v32_v9 = vand.u32 127, %v31_v8 }
   0x3   :  { %v22_v3 = vadd.f32 %v50_v1, %v14_v0  ;;  %v23_v4 = vld [vmem:[%s92_s2] sm:$0xff] }
   0x5   :  { %24 = vmax.xlane.f32.xlu0 %v22_v3 }
  0x1b   :  { %34 = vperm.xlu0 %52, %v23_v4  }
  0x8e   :  { %v25_v5 = vpop.xlane.xlu0 %24 }
  0x8f   :  { %v26_v6 = vsub.f32 %v22_v3, %v25_v5 }
  0x91   :  { %v27_v7 = vmul.f32 1.442695, %v26_v6 }
  0x93   :  { %53 = vpow2.f32 %v27_v7 }
  0x96   :  { %v35_v10 = vpop.permute.xlu0 %34 }
  0x97   :  { %vm36_vm0 = vcmp.eq.s32.totalorder %v32_v9, %v35_v10 }
  0x98   :  { %v37_v12 = vsel %vm36_vm0, %v22_v3, 0.0 }
  0xa0   :  { %v54_v11 = vpop.eup %53 }
  0xa1   :  { %29 = vadd.xlane.f32.xlu1 %v54_v11 }
  0xa5   :  { %38 = vadd.xlane.f32.xlu1 %v37_v12 }
 0x12a   :  { %v30_v13 = vpop.xlane.xlu1 %29 }
 0x12b   :  { %55 = vlog2.f32 %v30_v13 }
 0x12e   :  { %v39_v16 = vpop.xlane.xlu1 %38 }
 0x138   :  { %v56_v14 = vpop.eup %55 }
 0x139   :  { %v41_v15 = vmul.f32 0.6931472, %v56_v14 }
 0x13b   :  { %v42_v17 = vadd.f32 %v41_v15, %v25_v5 }
 0x13d   :  { %v43_v18 = vsub.f32 %v42_v17, %v39_v16 }
 0x13f   :  { %45 = vst.msk [vmem:[%s93_s3] sm:$0xff] %vm44_vm1, %v43_v18 }

</bundles_post_ra>
